<compile_context>
chip_gen: v7x
topology: tpu7x:2x2x1
jax: 0.10.0
libtpu: 0.0.40
codegen_flags: <defaults>
</compile_context>

<pallas_src>
import math
from functools import partial

import numpy as np
import jax
import jax.numpy as jnp
from jax import lax
from jax.experimental import pallas as pl
from jax.experimental.pallas import tpu as pltpu


# --------------------------------------------------------------------------
# helpers
# --------------------------------------------------------------------------
def _round_up(x, m):
    return ((x + m - 1) // m) * m


def _pick_chunk(flat, max_lanes):
    """Largest divisor of `flat` that is a multiple of 384 (= lcm(128, 3)) and
    <= max_lanes, so the lane tile is 128-aligned AND the per-lane channel
    pattern (lane % 3) is identical for every spatial-chunk grid step.
    Falls back to the full row (always a legal block dim; trivially
    grid-invariant because there is only one chunk, and flat % 3 == 0)."""
    best = 0
    if flat % 384 == 0:
        d = flat // 384
        for k in range(1, d + 1):
            c = 384 * k
            if d % k == 0 and c <= max_lanes:
                best = c
    return best if best > 0 else flat


# --------------------------------------------------------------------------
# Pallas kernel 1: per-frame spatial mean (process_video)
# --------------------------------------------------------------------------
def spatial_mean_rgb(frames, *, target_block_elems=2 * 1024 * 1024,
                     max_chunk_lanes=49152):
    """frames: (T, H, W, 3), any dtype -> (T, 3) float32 per-frame means."""
    T, H, W, C = frames.shape
    assert C == 3
    flat = H * W * C
    x = frames.reshape(T, flat)                 # contiguous reshape: free, no relayout

    itemsize = jnp.dtype(frames.dtype).itemsize
    row_mult = {1: 32, 2: 16}.get(itemsize, 8)  # sublane packing for 8/16/32-bit dtypes

    chunk = _pick_chunk(flat, max_chunk_lanes)  # lane tile (mult of 384, or full row)
    nj = flat // chunk

    # ~2M elements per tile: 8 MiB f32 working set after the in-kernel cast;
    # double-buffered input + temporaries fit every generation's VMEM
    # (48 MiB scoped limit keeps headroom on v7x's 64 MiB).
    tb = max(row_mult, (target_block_elems // chunk) // row_mult * row_mult)
    if tb >= T:
        if T >= 2 * row_mult:
            # v7x megacore: keep >= 2 blocks along the "parallel" T axis.
            tb = _round_up(pl.cdiv(T, 2), row_mult)
        else:
            tb = T
    ni = pl.cdiv(T, tb)
    inv_hw = 1.0 / float(H * W)

    # Grid-invariant one-hot channel masks (valid because chunk % 3 == 0 or nj == 1).
    lane_ch = lax.broadcasted_iota(jnp.int32, (3, chunk), 1) % 3
    row_ch = lax.broadcasted_iota(jnp.int32, (3, chunk), 0)
    masks = (lane_ch == row_ch).astype(jnp.float32)

    def kernel(x_ref, m_ref, o_ref, acc_ref):
        j = pl.program_id(1)

        @pl.when(j == 0)
        def _init():
            acc_ref[...] = jnp.zeros_like(acc_ref)

        xb = x_ref[...].astype(jnp.float32)                      # per-tile cast (no-op for f32)
        st = jnp.sum(xb, axis=-1, keepdims=True)                 # r+g+b total (no mask mul)
        s0 = jnp.sum(xb * m_ref[0:1, :], axis=-1, keepdims=True)
        s1 = jnp.sum(xb * m_ref[1:2, :], axis=-1, keepdims=True)
        s2 = st - s0 - s1                                        # 3rd channel for free
        acc_ref[...] += jnp.concatenate([s0, s1, s2], axis=-1)   # scratch accumulator

        @pl.when(j == pl.num_programs(1) - 1)
        def _finalize():
            o_ref[...] = acc_ref[...] * inv_hw                   # single output write

    return pl.pallas_call(
        kernel,
        out_shape=jax.ShapeDtypeStruct((T, 3), jnp.float32),
        grid=(ni, nj),
        in_specs=[pl.BlockSpec((tb, chunk), lambda i, j: (i, j)),
                  pl.BlockSpec((3, chunk), lambda i, j: (0, 0))],   # resident masks
        out_specs=pl.BlockSpec((tb, 3), lambda i, j: (i, 0)),
        scratch_shapes=[pltpu.VMEM((tb, 3), jnp.float32)],
        compiler_params=pltpu.CompilerParams(
            dimension_semantics=("parallel", "arbitrary"),
            vmem_limit_bytes=48 * 1024 * 1024),
    )(x, masks)


# --------------------------------------------------------------------------
# Pallas kernel 2: on-device window build + normalization + X/Y projection
# --------------------------------------------------------------------------
def chrom_project_windows(rgb, NWin, WinL, half, win_block=8):
    """rgb: (T, 3) per-frame means (device) -> (2, NWin, WinL) float32
    stacked [Xs; Ys] for the NWin half-overlapping windows."""
    T, C = rgb.shape
    assert C == 3
    rgb = rgb.astype(jnp.float32)
    Tu = half * (NWin + 1)
    # (NWin+1, 3, half): channel on sublanes, time on lanes.
    blocks = jnp.transpose(rgb[:Tu].reshape(NWin + 1, half, 3), (0, 2, 1))
    lo = blocks[:NWin]            # first half of every window
    hi = blocks[1:NWin + 1]       # second half of every window (shifted by one block)

    wb = win_block if NWin >= win_block else NWin     # windows per grid step
    NWp = _round_up(NWin, wb)
    if NWp != NWin:                                   # pad -> finite garbage, sliced off
        pad = ((0, NWp - NWin), (0, 0), (0, 0))
        lo = jnp.pad(lo, pad, constant_values=1.0)
        hi = jnp.pad(hi, pad, constant_values=1.0)

    inv_winl = 1.0 / float(WinL)

    def kernel(lo_ref, hi_ref, o_ref):
        lo_b = lo_ref[...]                                           # (wb, 3, half)
        hi_b = hi_ref[...]
        base = (jnp.sum(lo_b, axis=-1, keepdims=True) +
                jnp.sum(hi_b, axis=-1, keepdims=True)) * inv_winl    # per-channel window mean
        inv = pl.reciprocal(base)                                    # RGBNorm (recip*mul)
        nlo = lo_b * inv
        nhi = hi_b * inv
        o_ref[0, 0] = 3.0 * nlo[:, 0, :] - 2.0 * nlo[:, 1, :]        # Xs, first half
        o_ref[0, 1] = 3.0 * nhi[:, 0, :] - 2.0 * nhi[:, 1, :]        # Xs, second half
        o_ref[1, 0] = 1.5 * nlo[:, 0, :] + nlo[:, 1, :] - 1.5 * nlo[:, 2, :]   # Ys
        o_ref[1, 1] = 1.5 * nhi[:, 0, :] + nhi[:, 1, :] - 1.5 * nhi[:, 2, :]

    out = pl.pallas_call(
        kernel,
        out_shape=jax.ShapeDtypeStruct((2, 2, NWp, half), jnp.float32),
        grid=(NWp // wb,),
        in_specs=[pl.BlockSpec((wb, 3, half), lambda k: (k, 0, 0)),
                  pl.BlockSpec((wb, 3, half), lambda k: (k, 0, 0))],
        out_specs=pl.BlockSpec((2, 2, wb, half), lambda k: (0, 0, k, 0)),
        compiler_params=pltpu.CompilerParams(
            dimension_semantics=("parallel",)),
    )(lo, hi)
    xy = jnp.concatenate([out[:, 0], out[:, 1]], axis=-1)           # (2, NWp, WinL)
    return xy[:, :NWin, :]


@partial(jax.jit, static_argnames=("NWin", "WinL", "half"))
def _chrom_device_pipeline(frames, NWin, WinL, half):
    rgb = spatial_mean_rgb(frames)                   # (T, 3) stays on device
    return chrom_project_windows(rgb, NWin, WinL, half)


# --------------------------------------------------------------------------
# Host-side numpy equivalents of the scipy pieces (deterministic, no scipy)
# --------------------------------------------------------------------------
def _butter_bandpass(N, low, high):
    """scipy.signal.butter(N, [low, high], 'bandpass') in pure numpy."""
    fs = 2.0
    warped = 2.0 * fs * np.tan(np.pi * np.array([low, high]) / fs)
    bw = warped[1] - warped[0]
    wo = np.sqrt(warped[0] * warped[1])
    m = np.arange(-N + 1, N, 2)
    p = -np.exp(1j * np.pi * m / (2 * N))
    k = 1.0
    degree = N
    p_lp = p * bw / 2.0
    p_bp = np.concatenate((p_lp + np.sqrt(p_lp ** 2 - wo ** 2),
                           p_lp - np.sqrt(p_lp ** 2 - wo ** 2)))
    z_bp = np.zeros(degree, dtype=complex)
    k_bp = k * bw ** degree
    fs2 = 2.0 * fs
    z_d = (fs2 + z_bp) / (fs2 - z_bp)
    p_d = (fs2 + p_bp) / (fs2 - p_bp)
    z_d = np.append(z_d, -np.ones(degree))
    k_d = k_bp * np.real(np.prod(fs2 - z_bp) / np.prod(fs2 - p_bp))
    b = np.real(k_d * np.poly(z_d))
    a = np.real(np.poly(p_d))
    return b, a


def _lfilter_zi(b, a):
    n = max(len(a), len(b))
    b = np.concatenate([b, np.zeros(n - len(b))])
    a = np.concatenate([a, np.zeros(n - len(a))])
    comp = np.zeros((n - 1, n - 1))
    comp[0, :] = -a[1:] / a[0]
    comp[1:, :-1] = np.eye(n - 2)
    IminusA = np.eye(n - 1) - comp.T
    B = b[1:] - a[1:] * b[0]
    return np.linalg.solve(IminusA, B)


def _lfilter_batch(b, a, x, zi):
    """Direct-form II transposed IIR, batched over rows. x: (N, L), zi: (N, order)."""
    n = len(b)
    z = np.array(zi, dtype=np.float64)
    y = np.zeros(x.shape, dtype=np.float64)
    for i in range(x.shape[1]):
        xn = x[:, i]
        yn = b[0] * xn + z[:, 0]
        for j in range(n - 2):
            z[:, j] = b[j + 1] * xn + z[:, j + 1] - a[j + 1] * yn
        z[:, n - 2] = b[n - 1] * xn - a[n - 1] * yn
        y[:, i] = yn
    return y


def _filtfilt_batch(b, a, x):
    """scipy.signal.filtfilt defaults (padtype='odd', padlen=3*max(len(a),len(b))),
    batched over rows.  x: (N, L)."""
    padlen = 3 * max(len(a), len(b))
    assert x.shape[1] > padlen
    left = 2.0 * x[:, :1] - x[:, padlen:0:-1]
    right = 2.0 * x[:, -1:] - x[:, -2:-padlen - 2:-1]
    ext = np.concatenate((left, x, right), axis=1)
    zi = _lfilter_zi(b, a)[None, :]
    y = _lfilter_batch(b, a, ext, zi * ext[:, :1])
    y = _lfilter_batch(b, a, y[:, ::-1], zi * y[:, -1:])
    y = y[:, ::-1]
    return y[:, padlen:y.shape[1] - padlen]


# --------------------------------------------------------------------------
# Full CHROM_DEHAAN forward
# --------------------------------------------------------------------------
def _window_params(FN, FS=30, WinSec=1.6):
    WinL = math.ceil(WinSec * FS)
    if WinL % 2:
        WinL += 1
    half = WinL // 2
    NWin = math.floor((FN - half) / half)
    totallen = half * (NWin + 1)
    return WinL, half, NWin, totallen


def chrom_dehaan_forward(frames):
    """frames: (T, H, W, 3) array (any dtype) -> BVP numpy array (totallen,)."""
    LPF, HPF, FS, WinSec = 0.7, 2.5, 30, 1.6
    frames = jnp.asarray(frames)
    FN = frames.shape[0]
    WinL, half, NWin, totallen = _window_params(FN, FS, WinSec)
    assert NWin >= 1

    NyquistF = 0.5 * FS
    B, A = _butter_bandpass(3, LPF / NyquistF, HPF / NyquistF)

    # Entire device portion (spatial mean + window gather + X/Y projection) is
    # one jit: one dispatch, one D2H copy of the tiny (2, NWin, WinL) result.
    xy_dev = _chrom_device_pipeline(frames, NWin=NWin, WinL=WinL, half=half)
    xy = np.asarray(jax.block_until_ready(xy_dev), dtype=np.float64)
    Xs, Ys = xy[0], xy[1]                         # (NWin, WinL) each

    # TODO(synk): zero-phase order-3 IIR (filtfilt) is an inherently sequential
    # recursion with no clean Pallas equivalent; done on host, batched over windows.
    Xf = _filtfilt_batch(B, A, Xs)
    Yf = _filtfilt_batch(B, A, Ys)
    Alpha = Xf.std(axis=1) / Yf.std(axis=1)       # (NWin,)

    n = np.arange(WinL)
    hann = 0.5 - 0.5 * np.cos(2.0 * np.pi * n / (WinL - 1))   # signal.windows.hann
    SWin = (Xf - Alpha[:, None] * Yf) * hann[None, :]

    S = np.zeros(totallen)
    for i in range(NWin):
        WinS = i * half
        WinM = WinS + half
        WinE = WinS + WinL
        S[WinS:WinM] = S[WinS:WinM] + SWin[i, :half]
        S[WinM:WinE] = SWin[i, half:]
    return S


if __name__ == "__main__":
    key = jax.random.PRNGKey(0)
    T, H, W = 72, 16, 16                     # FN=72 -> WinL=48, half=24, NWin=2
    frames = jax.random.uniform(key, (T, H, W, 3), jnp.float32, 0.25, 1.0)
    f_np = np.asarray(frames, dtype=np.float64)

    # --- kernel 1 (f32 input): per-frame spatial mean vs numpy ---
    rgb_pal = np.asarray(jax.block_until_ready(spatial_mean_rgb(frames)))
    rgb_ref = f_np.reshape(T, -1, 3).sum(axis=1) / (H * W)
    assert np.allclose(rgb_pal, rgb_ref, rtol=1e-4, atol=1e-5)

    # --- kernel 1 (bf16 input; in-kernel cast path, no pre-kernel upcast) ---
    frames_bf16 = frames.astype(jnp.bfloat16)
    rgb_bf = np.asarray(jax.block_until_ready(spatial_mean_rgb(frames_bf16)))
    ref_bf = np.asarray(frames_bf16.astype(jnp.float32),
                        dtype=np.float64).reshape(T, -1, 3).sum(axis=1) / (H * W)
    assert np.allclose(rgb_bf, ref_bf, rtol=1e-4, atol=1e-5)

    # --- kernel 2 sanity check: windowed chrominance projection vs numpy ---
    FS, WinSec = 30, 1.6
    WinL, half, NWin, totallen = _window_params(T, FS, WinSec)
    xy_pal = np.asarray(jax.block_until_ready(
        chrom_project_windows(jnp.asarray(rgb_pal), NWin, WinL, half)),
        dtype=np.float64)
    idx = (np.arange(NWin) * half)[:, None] + np.arange(WinL)[None, :]
    wins = rgb_pal.astype(np.float64)[idx]                 # (NWin, WinL, 3)
    base = wins.mean(axis=1, keepdims=True)
    normn = wins / base
    xs_ref = 3.0 * normn[..., 0] - 2.0 * normn[..., 1]
    ys_ref = 1.5 * normn[..., 0] + normn[..., 1] - 1.5 * normn[..., 2]
    assert np.allclose(xy_pal[0], xs_ref, rtol=1e-4, atol=1e-5)
    assert np.allclose(xy_pal[1], ys_ref, rtol=1e-4, atol=1e-5)

    # --- full forward ---
    bvp = chrom_dehaan_forward(frames)
    assert bvp.shape == (totallen,)
    assert np.all(np.isfinite(bvp))
    print("KERNEL_OK")
</pallas_src>

<mosaic_0001>
module attributes {stable_mosaic.version = 11 : i64} {
  func.func @kernel(%arg0: i32, %arg1: i32, %arg2: memref<40x768xf32, #tpu.memory_space<vmem>>, %arg3: memref<3x768xf32, #tpu.memory_space<vmem>>, %arg4: memref<40x3xf32, #tpu.memory_space<vmem>>, %arg5: memref<40x3xf32, #tpu.memory_space<vmem>>) attributes {dimension_semantics = [#tpu.dimension_semantics<parallel>, #tpu.dimension_semantics<arbitrary>], iteration_bounds = array<i64: 2, 1>, scalar_prefetch = 0 : i64, scratch_operands = 1 : i64, tpu.core_type = #tpu.core_type<tc>, window_params = [{transform_indices = @transform_0, window_bounds = array<i64: 40, 768>}, {pipeline_mode = #tpu.pipeline_mode<synchronous>, transform_indices = @transform_1, window_bounds = array<i64: 3, 768>}, {transform_indices = @transform_2, window_bounds = array<i64: 40, 3>}]} {
    %c0_i32 = arith.constant 0 : i32
    %0 = arith.cmpi eq, %arg1, %c0_i32 : i32
    %1 = arith.extui %0 : i1 to i32
    %c0_i32_0 = arith.constant 0 : i32
    %2 = arith.cmpi ne, %1, %c0_i32_0 : i32
    scf.if %2 {
      %cst_13 = arith.constant 0.000000e+00 : f32
      %25 = vector.broadcast %cst_13 : f32 to vector<40x3xf32>
      %c0_14 = arith.constant 0 : index
      %c0_15 = arith.constant 0 : index
      %26 = vector.load %arg5[%c0_14, %c0_15] : memref<40x3xf32, #tpu.memory_space<vmem>>, vector<40x3xf32>
      tpu.vector_store %arg5[%c0_14, %c0_15], %25 {strides = array<i32>} : memref<40x3xf32, #tpu.memory_space<vmem>>, vector<40x3xf32>,
    } else {
    }
    %c0 = arith.constant 0 : index
    %c0_1 = arith.constant 0 : index
    %3 = vector.load %arg2[%c0, %c0_1] : memref<40x768xf32, #tpu.memory_space<vmem>>, vector<40x768xf32>
    %cst = arith.constant dense<0.000000e+00> : vector<40xf32>
    %4 = vector.multi_reduction <add>, %3, %cst [1] : vector<40x768xf32> to vector<40xf32>
    %5 = vector.shape_cast %4 : vector<40xf32> to vector<40x1xf32>
    %c0_2 = arith.constant 0 : index
    %c0_3 = arith.constant 0 : index
    %6 = vector.load %arg3[%c0_2, %c0_3] : memref<3x768xf32, #tpu.memory_space<vmem>>, vector<1x768xf32>
    %7 = vector.broadcast %6 : vector<1x768xf32> to vector<40x768xf32>
    %8 = arith.mulf %3, %7 : vector<40x768xf32>
    %cst_4 = arith.constant dense<0.000000e+00> : vector<40xf32>
    %9 = vector.multi_reduction <add>, %8, %cst_4 [1] : vector<40x768xf32> to vector<40xf32>
    %10 = vector.shape_cast %9 : vector<40xf32> to vector<40x1xf32>
    %c1 = arith.constant 1 : index
    %c0_5 = arith.constant 0 : index
    %11 = vector.load %arg3[%c1, %c0_5] : memref<3x768xf32, #tpu.memory_space<vmem>>, vector<1x768xf32>
    %12 = vector.broadcast %11 : vector<1x768xf32> to vector<40x768xf32>
    %13 = arith.mulf %3, %12 : vector<40x768xf32>
    %cst_6 = arith.constant dense<0.000000e+00> : vector<40xf32>
    %14 = vector.multi_reduction <add>, %13, %cst_6 [1] : vector<40x768xf32> to vector<40xf32>
    %15 = vector.shape_cast %14 : vector<40xf32> to vector<40x1xf32>
    %16 = arith.subf %5, %10 : vector<40x1xf32>
    %17 = arith.subf %16, %15 : vector<40x1xf32>
    %c0_7 = arith.constant 0 : index
    %c0_8 = arith.constant 0 : index
    %18 = vector.load %arg5[%c0_7, %c0_8] : memref<40x3xf32, #tpu.memory_space<vmem>>, vector<40x3xf32>
    %19 = tpu.concatenate %10, %15, %17 in 1 : vector<40x1xf32>, vector<40x1xf32>, vector<40x1xf32> -> vector<40x3xf32>
    %20 = arith.addf %18, %19 : vector<40x3xf32>
    %c0_9 = arith.constant 0 : index
    %c0_10 = arith.constant 0 : index
    %21 = vector.load %arg5[%c0_9, %c0_10] : memref<40x3xf32, #tpu.memory_space<vmem>>, vector<40x3xf32>
    tpu.vector_store %arg5[%c0_9, %c0_10], %20 {strides = array<i32>} : memref<40x3xf32, #tpu.memory_space<vmem>>, vector<40x3xf32>,
    %c0_i32_11 = arith.constant 0 : i32
    %22 = arith.cmpi eq, %arg1, %c0_i32_11 : i32
    %23 = arith.extui %22 : i1 to i32
    %c0_i32_12 = arith.constant 0 : i32
    %24 = arith.cmpi ne, %23, %c0_i32_12 : i32
    scf.if %24 {
      %c0_13 = arith.constant 0 : index
      %c0_14 = arith.constant 0 : index
      %25 = vector.load %arg5[%c0_13, %c0_14] : memref<40x3xf32, #tpu.memory_space<vmem>>, vector<40x3xf32>
      %cst_15 = arith.constant 3.906250e-03 : f32
      %26 = vector.broadcast %cst_15 : f32 to vector<40x3xf32>
      %27 = arith.mulf %25, %26 : vector<40x3xf32>
      %c0_16 = arith.constant 0 : index
      %c0_17 = arith.constant 0 : index
      %28 = vector.load %arg4[%c0_16, %c0_17] : memref<40x3xf32, #tpu.memory_space<vmem>>, vector<40x3xf32>
      tpu.vector_store %arg4[%c0_16, %c0_17], %27 {strides = array<i32>} : memref<40x3xf32, #tpu.memory_space<vmem>>, vector<40x3xf32>,
    } else {
    }
    return
  }
  func.func @transform_0(%arg0: i32, %arg1: i32) -> (i32, i32) {
    %c0_i32 = arith.constant 0 : i32
    return %arg0, %arg1 : i32, i32
  }
  func.func @transform_1(%arg0: i32, %arg1: i32) -> (i32, i32) {
    %c0_i32 = arith.constant 0 : i32
    %c0_i32_0 = arith.constant 0 : i32
    %c0_i32_1 = arith.constant 0 : i32
    return %c0_i32, %c0_i32_0 : i32, i32
  }
  func.func @transform_2(%arg0: i32, %arg1: i32) -> (i32, i32) {
    %c0_i32 = arith.constant 0 : i32
    %c0_i32_0 = arith.constant 0 : i32
    return %arg0, %c0_i32 : i32, i32
  }
}

</mosaic_0001>

<bundles_post_ra>
// kernel: tpu_custom_call.1
= control target key start
LH: loop header
LB: loop body
LE: loop exit
PB: predicated region body
PF: predicated region fallthrough
CT: control target
= control target key end

     0   :  { %7 = vsyncpa [#allocation4], 0  ;;  %s1659_s0 = inlined_call_operand.hbm [shape: f32[72,768], index: 0, kind: input, shape index: {}]   ;;  %s1660_s1 = inlined_call_operand.hbm [shape: f32[3,768], index: 1, kind: input, shape index: {}]   ;;  %s1661_s2 = inlined_call_operand.vmem [shape: f32[72,3], index: 2, kind: output, shape index: {}]  }
   0x1   :  { %9 = vsyncpa [#allocation4 + $0x1], 0 }
   0x2   :  { %10 = vsyncpa [#allocation6], 0  ;;  %s1156_s9 = smov 0   ;;  %s1158_s10 = smov 0  }
   0x3   :  { %s1160_s11 = smov 0   ;;  %s1162_s12 = smov 0  }
   0x4   :  { %s1164_s13 = smov 0   ;;  %s1166_s14 = smov 0  }
   0x5 LB: > { %s798_s15 = sadd.s32 4294967295, %s1102_s14   ;;  %s28_s16 = sadd.s32 1, %s1098_s13  ;;  %s1102_s14 = sphi %s1166_s14, %s16_s14   ;;  %s1098_s13 = sphi %s1164_s13, %s1690_s13   ;;  %s1094_s12 = sphi %s1162_s12, %s1689_s12   ;;  %s1090_s11 = sphi %s1160_s11, %s1688_s11   ;;  %s1086_s10 = sphi %s1158_s10, %s1687_s10   ;;  %s1082_s9 = sphi %s1156_s9, %s1686_s9  }
   0x6   : > { %p30_p0 = scmp.ge.s32.totalorder %s28_s16, 2  ;;  %s37_s17 = sadd.s32 1, %s1090_s11 }
   0x7   : > { %p44_p1 = scmp.ne.s32.totalorder %s1090_s11, %s1086_s10  ;;  %p45_p2 = scmp.eq.s32.totalorder %s1102_s14, 0 }
   0x8   : > { %s1692_s16 = smov (%p30_p0, %s28_s16), 0  ;;  %p50_p4 = scmp.ne.s32.totalorder %s1086_s10, %s1082_s9 }
   0x9   : > { %p1192_p3 = por %p45_p2, %p44_p1  ;;  %s32_s19 = ssub.s32 %s1098_s13, %s1692_s16 }
   0xa   : > { %p1199_p5 = scmp.eq.s32.totalorder %s798_s15, 0  ;;  %p35_p6 = scmp.eq.s32.totalorder %s32_s19, 0 }
   0xb   : > { %s1669_s18 = scalar_select %p1192_p3, 1, 0 }
   0xc   : > { %s1670_s20 = scalar_select %p1199_p5, 1, 0 }
   0xd   : > { %p95_p7 = scmp.eq.s32.totalorder %s798_s15, 1  ;;  %p1205_p8 = por %p1199_p5, %p50_p4 }
   0xe   : > { %p800_p9 = scmp.ge.s32.totalorder %s1102_s14, 1  ;;  %p108_p11 = scmp.lt.s32.totalorder %s1102_s14, 3 }
   0xf   : > { %s1671_s21 = scalar_select %p1205_p8, 1, 0 }
  0x10   : > { %s1211_s22 = scalar_select %p35_p6, %s1090_s11, %s37_s17  }
  0x11   : > { %p1213_p10 = por %p95_p7, %p44_p1  ;;  %p1218_p12 = pnand %p800_p9, %p108_p11 }
  0x12   : > { %s1136_s25 = smov [#allocation5]   ;;  %s960_s30 = scalar_lea.hbm %s1660_s1, 384 }
  0x13   : > { %s1672_s23 = scalar_select %p1213_p10, 1, 0 }
  0x14   : > { %s1673_s24 = scalar_select %p1218_p12, 1, 0 }
  0x15   : > { %s121_s26 = sshll.u32 %s1136_s25, 4  ;;  %p832_p13 = pneg %p1218_p12  ;;  %s122_s26 = int_to_ptr.vmem [resolvable:$true] %s121_s26 }
  0x16   : > { %p961_p1 = scmp.ne.s32.totalorder %s1660_s1, %s960_s30  ;;  %p967_p7 = scmp.lt.u32.totalorder %s960_s30, %s1660_s1 }
  0x17   : > { %p1226_p0 = pnand %p832_p13, %p1199_p5 }
  0x19   : > { %p962_p2 = pneg %p1226_p0 }
  0x1b   : > { %p963_p4 = pnand %p962_p2, %p961_p1 }
  0x1d   : > { %p964_p6 = pneg %p963_p4 }
  0x1f   : > { %p969_p9 = pnand %p967_p7, %p964_p6 }
  0x21   : > { %972 = shalt.err (!%p969_p9)
}
  0x22   : > { %s973_s7 = scalar_lea.vmem %s122_s26, 384  ;;  %p981_p5 = scmp.lt.s32.totalorder %s122_s26, %s122_s26 }
  0x23   : > { %p974_p11 = scmp.ne.s32.totalorder %s122_s26, %s973_s7  ;;  %p982_p8 = scmp.lt.s32.totalorder %s973_s7, %s973_s7 }
  0x25   : > { %p976_p13 = pnand %p974_p11, %p962_p2  ;;  %p983_p12 = por %p982_p8, %p981_p5 }
  0x27   : > { %p977_p10 = pneg %p976_p13 }
  0x29   : > { %p984_p3 = pnand %p983_p12, %p977_p10 }
  0x2b   : > { %987 = shalt.err (!%p984_p3)
}
  0x2c   : > { %835 = dma.hbm_to_vmem [thread:$0]  (!%p1226_p0), %s1660_s1, 384, %s122_s26, [#allocation6]  }
  0x2d   : > { %p802_p1 = scmp.ge.s32.totalorder %s1102_s14, 2 }
  0x2e   : > { %p1675_p4 = scmp.ne.s32.totalorder (!%p802_p1), %s1669_s18, 0 }
  0x2f   : > { %128 = sbr.rel (%p802_p1) target bundleno = 90 (0x5a), region = 20 }
  0x36   : > { %131 = sbr.rel (!%p1675_p4) target bundleno = 90 (0x5a), region = 24  ;;  %s132_s15 = sand.u32 (%p1675_p4), 1, %s1090_s11  }
  0x37   : > { %s137_s17 = smul.u32 (%p1675_p4), 5, %s1098_s13  ;;  %s1254_s29 = scalar_lea.sflag (%p1675_p4), [#allocation4], %s132_s15 }
  0x38   : > { %s823_s19 = smul.u32 (%p1675_p4), 240, %s132_s15 }
  0x39   : > { %s139_s25 = ssub.s32 (%p1675_p4), 9, %s137_s17 }
  0x3a   : > { %p140_p5 = scmp.lt.s32.totalorder (%p1675_p4), %s139_s25, 5  ;;  %s136_s26 = scalar_lea.vmem (%p1675_p4), [#allocation3], %s823_s19 }
  0x3d   : > { %s1694_s25 = smov (!%p140_p5, %s139_s25), 5 }
  0x3e   : > { %s1251_s28 = smul.u32 768, %s1694_s25 }
  0x40   : > { %s145_s27 = ssub.s32 3840, %s1251_s28 }
  0x41   : > { %146 = vsyncadd %s1254_s29, %s145_s27  ;;  %p805_p3 = scmp.ne.s32.totalorder %s1251_s28, 0  ;;  %s837_s18 = smul.u32 3840, %s1098_s13 }
  0x42   : > { %s153_s30 = sshll.u32 %s136_s26, 4  ;;  %s992_s9 = scalar_lea.hbm %s1659_s0, 6912  ;;  %s1264_s30 = int_to_ptr.vmem [resolvable:$true] %s153_s30 }
  0x43   : > { %s1262_s5 = scalar_lea.hbm %s1659_s0, %s837_s18 }
  0x44   : > { %s988_s6 = scalar_lea.hbm %s1262_s5, %s1251_s28  ;;  %p993_p0 = scmp.lt.u32.totalorder %s1262_s5, %s1659_s0 }
  0x45   : > { %p989_p8 = scmp.ne.s32.totalorder %s1262_s5, %s988_s6  ;;  %p994_p2 = scmp.lt.u32.totalorder %s992_s9, %s988_s6 }
  0x46   : > { %p996_p7 = scmp.lt.u32.totalorder %s988_s6, %s1262_s5 }
  0x47   : > { %p990_p10 = pnand %p989_p8, %p805_p3  ;;  %p995_p6 = por %p994_p2, %p993_p0 }
  0x49   : > { %p991_p12 = pneg %p990_p10  ;;  %p997_p9 = por %p996_p7, %p995_p6 }
  0x4b   : > { %p998_p11 = pnand %p997_p9, %p991_p12 }
  0x4d   : > { %1001 = shalt.err (!%p998_p11)
}
  0x4e   : > { %s1002_s19 = scalar_lea.vmem %s1264_s30, %s1251_s28  ;;  %s1137_s25 = smov [#allocation3]  }
  0x4f   : > { %p1003_p13 = scmp.ne.s32.totalorder %s1264_s30, %s1002_s19  ;;  %s1006_s27 = sshll.u32 %s1137_s25, 4  ;;  %s1007_s27 = int_to_ptr.vmem [resolvable:$false] %s1006_s27 }
  0x50   : > { %s1008_s26 = scalar_lea.vmem %s1007_s27, 7680  ;;  %p1009_p5 = scmp.lt.s32.totalorder %s1264_s30, %s1007_s27 }
  0x51   : > { %p1004_p1 = pnand %p1003_p13, %p805_p3  ;;  %p1010_p8 = scmp.lt.s32.totalorder %s1008_s26, %s1002_s19 }
  0x53   : > { %p1005_p4 = pneg %p1004_p1  ;;  %p1011_p10 = por %p1010_p8, %p1009_p5 }
  0x55   : > { %p1012_p0 = pnand %p1011_p10, %p1005_p4 }
  0x57   : > { %1015 = shalt.err (!%p1012_p0)
}
  0x58   : > { %s1138_s18 = smov 768   ;;  %s1139_s3 = smov 48  }
  0x59   : > { %159 = dma.hbm_to_vmem [thread:$0]  (%p805_p3), %s1262_s5, %s1251_s28, %s1264_s30, %s1254_s29, %s1138_s18, %s1138_s18, %s1139_s3  }
  0x5a PF: > { %p1676_p12 = scmp.ne.s32.totalorder %s1673_s24, 0 }
  0x5b   : > { %s1294_s4 = sand.u32 (!%p1676_p12), 1, %s1086_s10   ;;  %p1677_p2 = scmp.ne.s32.totalorder (!%p1676_p12), %s1671_s21, 0 }
  0x5c   : > { %165 = sbr.rel (%p1676_p12) target bundleno = 374 (0x176), region = 28  ;;  %s168_s7 = scalar_lea.sflag (!%p1676_p12), [#allocation4], %s1294_s4 }
  0x5d   : > { %s825_s6 = smul.u32 (!%p1676_p12), 240, %s1294_s4 }
  0x5f   : > { %s1298_s8 = scalar_lea.vmem (!%p1676_p12), [#allocation3], %s825_s6 }
  0x63   : > { %1073 = dma.done.wait (%p1677_p2), %s168_s7, 3840  }
  0x64   : > { %1075 = vsyncadd (%p1677_p2), %s168_s7, 4294963456  ;;  %p1678_p3 = scmp.ne.s32.totalorder %s1670_s20, 0 }
  0x66   : > { %1077 = dma.done.wait (%p1678_p3), [#allocation6], 384  }
  0x67   : > { %1079 = vsyncadd (%p1678_p3), [#allocation6], 4294966912  ;;  %v284_v0 = vlaneseq  ;;  %v1309_v1 = vld [vmem:[%s1298_s8 + $0x60] sm:$0xff]  ;;  %v1312_v2 = vld [vmem:[%s1298_s8 + $0x68] sm:$0xff]  ;;  %vm211_vm0 = vcmask 23552   ;;  %vm492_vm1 = vcmask 7168  }
  0x68   : > { %v1315_v3 = vld [vmem:[%s1298_s8 + $0x70] sm:$0xff]  ;;  %v1320_v5 = vld [vmem:[%s1298_s8 + $0x78] sm:$0xff]  ;;  %v261_v6 = vadd.f32 %v1312_v2, %v1309_v1  ;;  %v1325_v7 = vld [vmem:[%s1298_s8] sm:$0xff]  ;;  %vm498_vm2 = vcmask 15360   ;;  %s826_s20 = smul.u32 40, %s1294_s4  ;;  %p1682_p6 = scmp.ne.s32.totalorder %s1672_s23, 0 }
  0x69   : > { %v1317_v4 = vshrl.u32 %v284_v0, 7  ;;  %v1328_v8 = vld [vmem:[%s1298_s8 + $0x8] sm:$0xff]  ;;  %v1331_v9 = vld [vmem:[%s1298_s8 + $0x10] sm:$0xff]  ;;  %v1334_v10 = vld [vmem:[%s1298_s8 + $0x80] sm:$0xff]  ;;  %s540_s24 = smul.u32 (%p1682_p6), 5, %s1094_s12 }
  0x6a   : > { %v262_v11 = vadd.f32 %v261_v6, %v1315_v3  ;;  %v1338_v12 = vld [vmem:[%s1298_s8 + $0x18] sm:$0xff]  ;;  %v247_v13 = vadd.f32 %v1328_v8, %v1325_v7  ;;  %v1343_v14 = vld [vmem:[%s1298_s8 + $0x90] sm:$0xff]  ;;  %v1349_v16 = vld [vmem:[%s1298_s8 + $0xa0] sm:$0xff]  ;;  %s1582_s21 = scalar_lea.vmem [#allocation7], %s826_s20   ;;  %s822_s28 = smul.u32 (%p1682_p6), 40, %s1094_s12 }
  0x6b   : > { %v1346_v15 = vld [vmem:[%s1298_s8 + $0x98] sm:$0xff]  ;;  %v286_v17 = vsub.s32 0, %v1317_v4  ;;  %v1353_v18 = vld [vmem:[%s1298_s8 + $0x88] sm:$0xff]  ;;  %v1357_v20 = vld [vmem:[%s1298_s8 + $0x20] sm:$0xff]  ;;  %v290_v24 = vsub.s32 1, %v1317_v4  ;;  %v294_v28 = vsub.s32 2, %v1317_v4 }
  0x6c   : > { %v263_v19 = vadd.f32 %v262_v11, %v1320_v5  ;;  %v248_v21 = vadd.f32 %v247_v13, %v1331_v9  ;;  %v1361_v22 = vld [vmem:[%s1298_s8 + $0xa8] sm:$0xff]  ;;  %v268_v23 = vadd.f32 %v1346_v15, %v1343_v14  ;;  %v1367_v25 = vld [vmem:[%s1298_s8 + $0x30] sm:$0xff]  ;;  %v1370_v26 = vld [vmem:[%s1298_s8 + $0x38] sm:$0xff]  ;;  %v1668_v29 = vsub.s32 3, %v1317_v4  ;;  %s541_s29 = ssub.s32 (%p1682_p6), 9, %s540_s24  ;;  %s1602_s9 = scalar_lea.vmem (%p1682_p6), %s1661_s2, %s822_s28  }
  0x6d   : > { %v1373_v27 = vld [vmem:[%s1298_s8 + $0x40] sm:$0xff]  ;;  %v1667_v30 = vsub.s32 4, %v1317_v4  ;;  %v1380_v32 = vld [vmem:[%s1298_s8 + $0x28] sm:$0xff]  ;;  %v254_v35 = vadd.f32 %v1370_v26, %v1367_v25  ;;  %v1387_v36 = vld [vmem:[%s1298_s8 + $0xb0] sm:$0xff]  ;;  %v1666_v39 = vsub.s32 5, %v1317_v4  ;;  %p542_p7 = scmp.lt.s32.totalorder (%p1682_p6), %s541_s29, 5 }
  0x6e   : > { %v264_v31 = vadd.f32 %v263_v19, %v1334_v10  ;;  %v249_v33 = vadd.f32 %v248_v21, %v1338_v12  ;;  %v269_v34 = vadd.f32 %v268_v23, %v1349_v16  ;;  %v1390_v37 = vld [vmem:[%s1298_s8 + $0x48] sm:$0xff]  ;;  %v1398_v44 = vld [vmem:[%s1298_s8 + $0xb8] sm:$0xff]  ;;  %v1401_v45 = vld [vmem:[%s1298_s8 + $0x50] sm:$0xff] }
  0x6f   : > { %v282_v38 = vld [vmem:[#allocation5] ss:$4 sm:$0x3f]  ;;  %v255_v43 = vadd.f32 %v254_v35, %v1373_v27 }
  0x70   : > { %v265_v40 = vadd.f32 %v264_v31, %v1353_v18  ;;  %v250_v41 = vadd.f32 %v249_v33, %v1357_v20  ;;  %v270_v42 = vadd.f32 %v269_v34, %v1361_v22  ;;  %v1405_v46 = vrot.slane %v282_v38, %v286_v17  ;;  %v1427_v54 = vld [vmem:[%s1298_s8 + $0xc0] sm:$0xff]  ;;  %v1430_v55 = vld [vmem:[%s1298_s8 + $0xc8] sm:$0xff]  ;;  %v1433_v56 = vld [vmem:[%s1298_s8 + $0x58] sm:$0xff] }
  0x71   : > { %v1409_v47 = vrot.slane %v282_v38, %v290_v24  ;;  %v1413_v48 = vrot.slane %v282_v38, %v294_v28  ;;  %v1417_v49 = vrot.slane %v282_v38, %v1668_v29  ;;  %v256_v52 = vadd.f32 %v255_v43, %v1390_v37  ;;  %v1448_v63 = vld [vmem:[%s1298_s8 + $0xd0] sm:$0xff]  ;;  %v1460_v23 = vld [vmem:[%s1298_s8 + $0xd8] sm:$0xff] }
  0x72   : > { %266 = vadd.xlane.f32.xlu1 %v265_v40  ;;  %v251_v50 = vadd.f32 %v250_v41, %v1380_v32  ;;  %v271_v51 = vadd.f32 %v270_v42, %v1387_v36  ;;  %v1424_v53 = vrot.slane %v282_v38, %v1667_v30  ;;  %v1437_v57 = vrot.slane %v282_v38, %v1666_v39  ;;  %v1472_v41 = vld [vmem:[%s1298_s8 + $0xe0] sm:$0xff] }
  0x73   : > { %v314_v58 = vmul.f32 %v1405_v46, %v1325_v7  ;;  %v315_v59 = vmul.f32 %v1409_v47, %v1328_v8  ;;  %v316_v60 = vmul.f32 %v1413_v48, %v1331_v9  ;;  %v257_v62 = vadd.f32 %v256_v52, %v1401_v45 }
  0x74   : > { %252 = vadd.xlane.f32.xlu0 %v251_v50  ;;  %v272_v61 = vadd.f32 %v271_v51, %v1398_v44  ;;  %v317_v0 = vmul.f32 %v1417_v49, %v1338_v12  ;;  %v275_v11 = vadd.f32 %v1430_v55, %v1427_v54  ;;  %v326_v13 = vmul.f32 %v1405_v46, %v1309_v1 }
  0x75   : > { %v344_v6 = vadd.f32 %v315_v59, %v314_v58  ;;  %v258_v19 = vadd.f32 %v257_v62, %v1433_v56  ;;  %v318_v21 = vmul.f32 %v1424_v53, %v1357_v20  ;;  %v327_v31 = vmul.f32 %v1409_v47, %v1312_v2 }
  0x76   : > { %273 = vadd.xlane.f32.xlu1 %v272_v61  ;;  %v328_v33 = vmul.f32 %v1413_v48, %v1315_v3  ;;  %v319_v34 = vmul.f32 %v1437_v57, %v1380_v32  ;;  %v276_v38 = vadd.f32 %v275_v11, %v1448_v63  ;;  %v329_v40 = vmul.f32 %v1417_v49, %v1320_v5  ;;  %v1486_v61 = vld [vmem:[%s1298_s8 + $0xe8] sm:$0xff] }
  0x77   : > { %v345_v35 = vadd.f32 %v344_v6, %v316_v60  ;;  %v358_v42 = vadd.f32 %v327_v31, %v326_v13  ;;  %v320_v43 = vmul.f32 %v1405_v46, %v1367_v25  ;;  %v321_v50 = vmul.f32 %v1409_v47, %v1370_v26 }
  0x78   : > { %259 = vadd.xlane.f32.xlu0 %v258_v19  ;;  %v322_v51 = vmul.f32 %v1413_v48, %v1373_v27  ;;  %v277_v58 = vadd.f32 %v276_v38, %v1460_v23  ;;  %v330_v59 = vmul.f32 %v1424_v53, %v1334_v10  ;;  %v331_v60 = vmul.f32 %v1437_v57, %v1353_v18 }
  0x79   : > { %v346_v52 = vadd.f32 %v345_v35, %v317_v0  ;;  %v359_v62 = vadd.f32 %v358_v42, %v328_v33  ;;  %v323_v6 = vmul.f32 %v1417_v49, %v1390_v37  ;;  %v351_v11 = vadd.f32 %v321_v50, %v320_v43 }
  0x7a   : > { %v338_v13 = vmul.f32 %v1405_v46, %v1427_v54  ;;  %v278_v0 = vadd.f32 %v277_v58, %v1472_v41  ;;  %v339_v31 = vmul.f32 %v1409_v47, %v1430_v55  ;;  %v340_v35 = vmul.f32 %v1413_v48, %v1448_v63 }
  0x7b   : > { %v347_v19 = vadd.f32 %v346_v52, %v318_v21  ;;  %v360_v38 = vadd.f32 %v359_v62, %v329_v40  ;;  %v324_v33 = vmul.f32 %v1424_v53, %v1401_v45  ;;  %v325_v42 = vmul.f32 %v1437_v57, %v1433_v56  ;;  %v380_v62 = vld [vmem:[#allocation5 + $0x1] ss:$4 sm:$0x3f] }
  0x7c   : > { %v352_v43 = vadd.f32 %v351_v11, %v322_v51  ;;  %v279_v39 = vadd.f32 %v278_v0, %v1486_v61  ;;  %v341_v21 = vmul.f32 %v1417_v49, %v1460_v23  ;;  %v372_v52 = vadd.f32 %v339_v31, %v338_v13 }
  0x7d   : > { %v348_v50 = vadd.f32 %v347_v19, %v319_v34  ;;  %v361_v58 = vadd.f32 %v360_v38, %v330_v59  ;;  %v332_v29 = vmul.f32 %v1405_v46, %v1343_v14  ;;  %v333_v40 = vmul.f32 %v1409_v47, %v1346_v15 }
  0x7e   : > { %v353_v30 = vadd.f32 %v352_v43, %v323_v6  ;;  %280 = vadd.xlane.f32.xlu0 %v279_v39  ;;  %v342_v34 = vmul.f32 %v1424_v53, %v1472_v41  ;;  %v373_v51 = vadd.f32 %v372_v52, %v340_v35  ;;  %v334_v11 = vmul.f32 %v1413_v48, %v1349_v16 }
  0x7f   : > { %349 = vadd.xlane.f32.xlu1 %v348_v50  ;;  %v362_v19 = vadd.f32 %v361_v58, %v331_v60  ;;  %v343_v59 = vmul.f32 %v1437_v57, %v1486_v61  ;;  %v335_v46 = vmul.f32 %v1417_v49, %v1361_v22  ;;  %v365_v47 = vadd.f32 %v333_v40, %v332_v29 }
  0x80   : > { %v354_v13 = vadd.f32 %v353_v30, %v324_v33  ;;  %v374_v6 = vadd.f32 %v373_v51, %v341_v21  ;;  %v385_v39 = vrot.slane %v380_v62, %v286_v17  ;;  %v389_v0 = vrot.slane %v380_v62, %v290_v24 }
  0x81   : > { %v336_v48 = vmul.f32 %v1424_v53, %v1387_v36  ;;  %v393_v30 = vrot.slane %v380_v62, %v294_v28  ;;  %v1679_v60 = vsub.s32 3, %v1317_v4  ;;  %v366_v38 = vadd.f32 %v365_v47, %v334_v11 }
  0x82   : > { %v355_v31 = vadd.f32 %v354_v13, %v325_v42  ;;  %v375_v49 = vadd.f32 %v374_v6, %v342_v34  ;;  %v1680_v29 = vsub.s32 4, %v1317_v4  ;;  %v418_v17 = vmul.f32 %v385_v39, %v1367_v25 }
  0x83   : > { %v397_v35 = vrot.slane %v380_v62, %v1679_v60  ;;  %363 = vadd.xlane.f32.xlu1 %v362_v19  ;;  %v337_v24 = vmul.f32 %v1437_v57, %v1398_v44  ;;  %v419_v53 = vmul.f32 %v389_v0, %v1370_v26  ;;  %v420_v42 = vmul.f32 %v393_v30, %v1373_v27 }
  0x84   : > { %v401_v33 = vrot.slane %v380_v62, %v1680_v29  ;;  %356 = vadd.xlane.f32.xlu0 %v355_v31  ;;  %v376_v28 = vadd.f32 %v375_v49, %v343_v59  ;;  %v367_v43 = vadd.f32 %v366_v38, %v335_v46  ;;  %v1681_v50 = vsub.s32 5, %v1317_v4 }
  0x85   : > { %v412_v52 = vmul.f32 %v385_v39, %v1325_v7  ;;  %v421_v58 = vmul.f32 %v397_v35, %v1390_v37  ;;  %v449_v40 = vadd.f32 %v419_v53, %v418_v17  ;;  %v413_v25 = vmul.f32 %v389_v0, %v1328_v8 }
  0x86   : > { %v405_v21 = vrot.slane %v380_v62, %v1681_v50  ;;  %v414_v34 = vmul.f32 %v393_v30, %v1331_v9  ;;  %v368_v57 = vadd.f32 %v367_v43, %v336_v48  ;;  %v422_v26 = vmul.f32 %v401_v33, %v1401_v45 }
  0x87   : > { %377 = vadd.xlane.f32.xlu1 %v376_v28  ;;  %v415_v27 = vmul.f32 %v397_v35, %v1338_v12  ;;  %v430_v51 = vmul.f32 %v385_v39, %v1343_v14  ;;  %v450_v11 = vadd.f32 %v449_v40, %v420_v42  ;;  %v442_v4 = vadd.f32 %v413_v25, %v412_v52 }
  0x88   : > { %v431_v62 = vmul.f32 %v389_v0, %v1346_v15  ;;  %v432_v7 = vmul.f32 %v393_v30, %v1349_v16  ;;  %v369_v37 = vadd.f32 %v368_v57, %v337_v24  ;;  %v423_v19 = vmul.f32 %v405_v21, %v1433_v56 }
  0x89   : > { %v416_v8 = vmul.f32 %v401_v33, %v1357_v20  ;;  %v433_v9 = vmul.f32 %v397_v35, %v1361_v22  ;;  %v451_v13 = vadd.f32 %v450_v11, %v421_v58  ;;  %v443_v59 = vadd.f32 %v442_v4, %v414_v34 }
  0x8a   : > { %v463_v45 = vadd.f32 %v431_v62, %v430_v51  ;;  %v424_v12 = vmul.f32 %v385_v39, %v1309_v1  ;;  %370 = vadd.xlane.f32.xlu0 %v369_v37  ;;  %v417_v14 = vmul.f32 %v405_v21, %v1380_v32  ;;  %v434_v46 = vmul.f32 %v401_v33, %v1387_v36 }
  0x8b   : > { %v425_v15 = vmul.f32 %v389_v0, %v1312_v2  ;;  %v426_v16 = vmul.f32 %v393_v30, %v1315_v3  ;;  %v452_v6 = vadd.f32 %v451_v13, %v422_v26  ;;  %v444_v56 = vadd.f32 %v443_v59, %v415_v27 }
  0x8c   : > { %v464_v47 = vadd.f32 %v463_v45, %v432_v7  ;;  %v427_v20 = vmul.f32 %v397_v35, %v1320_v5  ;;  %v436_v31 = vmul.f32 %v385_v39, %v1427_v54  ;;  %v437_v48 = vmul.f32 %v389_v0, %v1430_v55 }
  0x8d   : > { %v456_v22 = vadd.f32 %v425_v15, %v424_v12  ;;  %v438_v1 = vmul.f32 %v393_v30, %v1448_v63  ;;  %v453_v60 = vadd.f32 %v452_v6, %v423_v19  ;;  %v445_v32 = vadd.f32 %v444_v56, %v416_v8 }
  0x8e   : > { %v435_v36 = vmul.f32 %v405_v21, %v1398_v44  ;;  %v465_v49 = vadd.f32 %v464_v47, %v433_v9  ;;  %v428_v2 = vmul.f32 %v401_v33, %v1334_v10  ;;  %v439_v38 = vmul.f32 %v397_v35, %v1460_v23 }
  0x8f   : > { %v457_v3 = vadd.f32 %v456_v22, %v426_v16  ;;  %v470_v29 = vadd.f32 %v437_v48, %v436_v31  ;;  %454 = vadd.xlane.f32.xlu1 %v453_v60  ;;  %v446_v5 = vadd.f32 %v445_v32, %v417_v14  ;;  %v429_v54 = vmul.f32 %v405_v21, %v1353_v18 }
  0x90   : > { %v466_v17 = vadd.f32 %v465_v49, %v434_v46  ;;  %v440_v55 = vmul.f32 %v401_v33, %v1472_v41  ;;  %v441_v44 = vmul.f32 %v405_v21, %v1486_v61  ;;  %v1140_v35 = vmov 0.0  }
  0x91   : > { %v458_v39 = vadd.f32 %v457_v3, %v427_v20  ;;  %v471_v63 = vadd.f32 %v470_v29, %v438_v1  ;;  %447 = vadd.xlane.f32.xlu0 %v446_v5  ;;  %213 = vst.msk [vmem:[#allocation2 + $0x8] sm:$0xff] %vm211_vm0, %v1140_v35  ;;  %212 = vst.msk [vmem:[#allocation2] sm:$0xff] %vm211_vm0, %v1140_v35 }
  0x92   : > { %v467_v0 = vadd.f32 %v466_v17, %v435_v36  ;;  %214 = vst.msk [vmem:[#allocation2 + $0x10] sm:$0xff] %vm211_vm0, %v1140_v35  ;;  %215 = vst.msk [vmem:[#allocation2 + $0x18] sm:$0xff] %vm211_vm0, %v1140_v35 }
  0x93   : > { %v459_v30 = vadd.f32 %v458_v39, %v428_v2  ;;  %v472_v24 = vadd.f32 %v471_v63, %v439_v38  ;;  %216 = vst.msk [vmem:[#allocation2 + $0x20] sm:$0xff] %vm211_vm0, %v1140_v35 }
  0x94   : > { %468 = vadd.xlane.f32.xlu1 %v467_v0 }
  0x95   : > { %v460_v10 = vadd.f32 %v459_v30, %v429_v54  ;;  %v473_v53 = vadd.f32 %v472_v24, %v440_v55 }
  0x97   : > { %461 = vadd.xlane.f32.xlu0 %v460_v10  ;;  %v474_v23 = vadd.f32 %v473_v53, %v441_v44 }
  0x98   : > { %v488_v57 = vld [vmem:[#allocation2 + $0x8] sm:$0xff]  ;;  %v487_v62 = vld [vmem:[#allocation2] sm:$0xff] }
  0x99   : > { %v490_v13 = vld [vmem:[#allocation2 + $0x18] sm:$0xff]  ;;  %v489_v6 = vld [vmem:[#allocation2 + $0x10] sm:$0xff] }
  0x9a   : > { %v491_v1 = vld [vmem:[#allocation2 + $0x20] sm:$0xff] }
  0x9b   : > { %475 = vadd.xlane.f32.xlu0 %v474_v23 }
  0xff   : > { %v267_v18 = vpop.xlane.xlu1 %266 }
 0x101   : > { %v253_v41 = vpop.xlane.xlu0 %252 }
 0x103   : > { %v274_v61 = vpop.xlane.xlu1 %273 }
 0x105   : > { %v260_v33 = vpop.xlane.xlu0 %259 }
 0x10b   : > { %v281_v28 = vpop.xlane.xlu0 %280 }
 0x10c   : > { %v350_v42 = vpop.xlane.xlu1 %349 }
 0x10d   : > { %v477_v25 = vsub.f32 %v253_v41, %v350_v42 }
 0x110   : > { %v364_v43 = vpop.xlane.xlu1 %363 }
 0x111   : > { %v357_v50 = vpop.xlane.xlu0 %356  ;;  %v479_v45 = vsub.f32 %v267_v18, %v364_v43 }
 0x112   : > { %v478_v58 = vsub.f32 %v260_v33, %v357_v50 }
 0x114   : > { %v378_v21 = vpop.xlane.xlu1 %377 }
 0x115   : > { %v481_v47 = vsub.f32 %v281_v28, %v378_v21 }
 0x117   : > { %v371_v52 = vpop.xlane.xlu0 %370 }
 0x118   : > { %v480_v51 = vsub.f32 %v274_v61, %v371_v52 }
 0x11c   : > { %v455_v40 = vpop.xlane.xlu1 %454 }
 0x11d   : > { %v483_v34 = vsub.f32 %v478_v58, %v455_v40  ;;  %v494_v26 = vsel %vm492_vm1, %v357_v50, %v455_v40 }
 0x11e   : > { %v448_v27 = vpop.xlane.xlu0 %447 }
 0x11f   : > { %v500_v11 = vsel %vm498_vm2, %v494_v26, %v483_v34  ;;  %v482_v4 = vsub.f32 %v477_v25, %v448_v27  ;;  %v493_v7 = vsel %vm492_vm1, %v350_v42, %v448_v27 }
 0x120   : > { %v505_v37 = vadd.f32 %v500_v11, %v488_v57 }
 0x121   : > { %v469_v19 = vpop.xlane.xlu1 %468  ;;  %v499_v8 = vsel %vm498_vm2, %v493_v7, %v482_v4 }
 0x122   : > { %v485_v9 = vsub.f32 %v480_v51, %v469_v19  ;;  %v496_v59 = vsel %vm492_vm1, %v371_v52, %v469_v19  ;;  %511 = vst.msk [vmem:[#allocation2 + $0x8] sm:$0xff] %vm211_vm0, %v505_v37  ;;  %v504_v12 = vadd.f32 %v499_v8, %v487_v62 }
 0x124   : > { %v502_v14 = vsel %vm498_vm2, %v496_v59, %v485_v9  ;;  %v462_v46 = vpop.xlane.xlu0 %461  ;;  %510 = vst.msk [vmem:[#allocation2] sm:$0xff] %vm211_vm0, %v504_v12 }
 0x125   : > { %v507_v15 = vadd.f32 %v502_v14, %v490_v13  ;;  %v484_v16 = vsub.f32 %v479_v45, %v462_v46  ;;  %v495_v56 = vsel %vm492_vm1, %v364_v43, %v462_v46 }
 0x127   : > { %513 = vst.msk [vmem:[#allocation2 + $0x18] sm:$0xff] %vm211_vm0, %v507_v15  ;;  %v501_v20 = vsel %vm498_vm2, %v495_v56, %v484_v16 }
 0x128   : > { %v506_v22 = vadd.f32 %v501_v20, %v489_v6  ;;  %v476_v31 = vpop.xlane.xlu0 %475 }
 0x129   : > { %v486_v48 = vsub.f32 %v481_v47, %v476_v31  ;;  %v497_v60 = vsel %vm492_vm1, %v378_v21, %v476_v31  ;;  %v519_v32 = vld [vmem:[#allocation2 + $0x8] sm:$0xff] }
 0x12a   : > { %512 = vst.msk [vmem:[#allocation2 + $0x10] sm:$0xff] %vm211_vm0, %v506_v22  ;;  %v524_v36 = vmul.f32 0.00390625, %v519_v32 }
 0x12b   : > { %v503_v49 = vsel %vm498_vm2, %v497_v60, %v486_v48  ;;  %v518_v2 = vld [vmem:[#allocation2] sm:$0xff] }
 0x12c   : > { %v508_v3 = vadd.f32 %v503_v49, %v491_v1  ;;  %529 = vst.msk [vmem:[%s1582_s21 + $0x8] sm:$0xff] %vm211_vm0, %v524_v36  ;;  %v523_v38 = vmul.f32 0.00390625, %v518_v2 }
 0x12e   : > { %v521_v29 = vld [vmem:[#allocation2 + $0x18] sm:$0xff]  ;;  %514 = vst.msk [vmem:[#allocation2 + $0x20] sm:$0xff] %vm211_vm0, %v508_v3  ;;  %528 = vst.msk [vmem:[%s1582_s21] sm:$0xff] %vm211_vm0, %v523_v38 }
 0x12f   : > { %v526_v5 = vmul.f32 0.00390625, %v521_v29 }
 0x131   : > { %531 = vst.msk [vmem:[%s1582_s21 + $0x18] sm:$0xff] %vm211_vm0, %v526_v5  ;;  %v520_v17 = vld [vmem:[#allocation2 + $0x10] sm:$0xff] }
 0x132   : > { %v525_v54 = vmul.f32 0.00390625, %v520_v17  ;;  %539 = sbr.rel (!%p1682_p6) target bundleno = 374 (0x176), region = 48 }
 0x134   : > { %530 = vst.msk [vmem:[%s1582_s21 + $0x10] sm:$0xff] %vm211_vm0, %v525_v54 }
 0x135   : > { %v522_v39 = vld [vmem:[#allocation2 + $0x20] sm:$0xff] }
 0x136   : > { %v527_v55 = vmul.f32 0.00390625, %v522_v39 }
 0x138   : > { %532 = vst.msk [vmem:[%s1582_s21 + $0x20] sm:$0xff] %vm211_vm0, %v527_v55 }
 0x139   : > { %s1696_s29 = smov (!%p542_p7, %s541_s29), 5 }
 0x13a   : > { %s810_s15 = sshll.u32 %s1696_s29, 7 }
 0x13b   : > { %p813_p9 = scmp.eq.s32.totalorder %s810_s15, 0 }
 0x13c   : > { %956 = sdivrem.u32 (!%p813_p9), %s1696_s29, 5 }
 0x13d   : > { %550 = sbr.rel (%p813_p9) target bundleno = 374 (0x176), region = 52 }
 0x145   : > { %s1608_s23 = spop.drf %956 }
 0x146   : > { %p814_p11 = scmp.le.s32.totalorder %s1608_s23, 0 }
 0x147   : > { %s1683_s12 = smov (!%p814_p11), %s1602_s9  ;;  %s1684_s17 = smov (!%p814_p11), %s1582_s21 }
 0x148   : > { %734 = sbr.rel (%p814_p11) target bundleno = 345 (0x159), region = 135  ;;  %s1617_s19 = smov (!%p814_p11), 0  }
 0x149   : > { %s1619_s25 = smov (!%p814_p11), 0  }
 0x14f LB: >> { %v622_v63 = vld [vmem:[%s1110_s17] sm:$0xff]  ;;  %v624_v0 = vld [vmem:[%s1110_s17 + $0x8] sm:$0xff]  ;;  %v626_v30 = vld [vmem:[%s1110_s17 + $0x10] sm:$0xff]  ;;  %s632_s27 = sadd.s32 1, %s1114_s19  ;;  %s616_s25 = sadd.s32 1, %s1118_s25   ;;  %s1118_s25 = sphi %s1619_s25, %s616_s25   ;;  %s1114_s19 = sphi %s1617_s19, %s1685_s19   ;;  %s1110_s17 = sphi %s1684_s17, %s637_s17   ;;  %s1106_s12 = sphi %s1683_s12, %s638_s12  }
 0x150   : >> { %623 = vst [vmem:[%s1106_s12] sm:$0xff] %v622_v63  ;;  %625 = vst [vmem:[%s1106_s12 + $0x8] sm:$0xff] %v624_v0  ;;  %v628_v44 = vld [vmem:[%s1110_s17 + $0x18] sm:$0xff]  ;;  %v630_v24 = vld [vmem:[%s1110_s17 + $0x20] sm:$0xff]  ;;  %p633_p13 = scmp.ge.s32.totalorder %s632_s27, %s1608_s23  ;;  %p615_p1 = scmp.ge.s32.totalorder %s616_s25, %s1608_s23 }
 0x151   : >> { %627 = vst [vmem:[%s1106_s12 + $0x10] sm:$0xff] %v626_v30  ;;  %629 = vst [vmem:[%s1106_s12 + $0x18] sm:$0xff] %v628_v44 }
 0x152   : >> { %631 = vst [vmem:[%s1106_s12 + $0x20] sm:$0xff] %v630_v24  ;;  %s1698_s27 = smov (%p633_p13, %s632_s27), 0  ;;  %618 = sbr.rel (!%p615_p1) target bundleno = 335 (0x14f), region = 141 }
 0x153   : >> { %s635_s26 = smul.u32 40, %s1698_s27  ;;  %s1685_s19 = smov %s1698_s27 }
 0x155   : >> { %s637_s17 = scalar_lea.vmem %s1582_s21, %s635_s26 [#allocation7]   ;;  %s638_s12 = scalar_lea.vmem %s1602_s9, %s635_s26  }
 0x159 PF: > { %958 = sdivrem.u32 %s1696_s29, 5 }
 0x15a   : > { %s815_s18 = smul.u32 40, %s1608_s23 }
 0x15c   : > { %s643_s3 = scalar_lea.vmem %s1582_s21, %s815_s18 [#allocation7]   ;;  %s645_s4 = scalar_lea.vmem %s1602_s9, %s815_s18  }
 0x162   : > { %s959_s6 = spop.drf %958 }
 0x163   : > { %p817_p4 = scmp.le.s32.totalorder %s959_s6, 0 }
 0x164   : > { %s1120_s7 = smov (!%p817_p4), %s645_s4   ;;  %s1124_s8 = smov (!%p817_p4), %s643_s3  }
 0x165   : > { %748 = sbr.rel (%p817_p4) target bundleno = 374 (0x176), region = 146  ;;  %s1128_s20 = smov (!%p817_p4), 0  }
 0x166   : > { %s1132_s24 = smov (!%p817_p4), 0  }
 0x16c LB: >> { %v655_v10 = vld [vmem:[%s1126_s8] sm:$0xff]  ;;  %s657_s28 = sadd.s32 1, %s1130_s20  ;;  %s649_s24 = sadd.s32 1, %s1134_s24   ;;  %s1134_s24 = sphi %s1132_s24, %s649_s24   ;;  %s1130_s20 = sphi %s1128_s20, %s1129_s20   ;;  %s1126_s8 = sphi %s1124_s8, %s662_s8   ;;  %s1122_s7 = sphi %s1120_s7, %s663_s7  }
 0x16d   : >> { %656 = vst [vmem:[%s1122_s7] sm:$0xff] %v655_v10  ;;  %p658_p5 = scmp.ge.s32.totalorder %s657_s28, %s959_s6  ;;  %p648_p8 = scmp.ge.s32.totalorder %s649_s24, %s959_s6 }
 0x16f   : >> { %s1700_s28 = smov (%p658_p5, %s657_s28), 0  ;;  %651 = sbr.rel (!%p648_p8) target bundleno = 364 (0x16c), region = 152 }
 0x170   : >> { %s818_s21 = sshll.u32 %s1700_s28, 3  ;;  %s1129_s20 = smov %s1700_s28  }
 0x171   : >> { %s662_s8 = scalar_lea.vmem %s643_s3, %s818_s21 [#allocation7]   ;;  %s663_s7 = scalar_lea.vmem %s645_s4, %s818_s21  }
 0x176 PF: > { %s16_s14 = sadd.s32 1, %s1102_s14   ;;  %s1686_s9 = smov %s1086_s10 }
 0x177   : > { %p13_p10 = scmp.ge.s32.totalorder %s16_s14, 4   ;;  %s1687_s10 = smov %s1090_s11 }
 0x178   : > { %s1688_s11 = smov %s1211_s22  ;;  %s1689_s12 = smov %s1098_s13 }
 0x179   : > { %s1690_s13 = smov %s1692_s16  ;;  %15 = sbr.rel (!%p13_p10) target bundleno = 5 (0x5), region = 163 }
 0x180   :  { %679 = vsyncpa [#allocation4], 1 }
 0x181   :  { %681 = vsyncpa [#allocation4 + $0x1], 1 }
 0x182   :  { %682 = vsyncpa [#allocation6], 1 }

</bundles_post_ra>
